<compile_context>
chip_gen: v5e
topology: v5e:2x2
jax: 0.10.0
libtpu: 0.0.40
codegen_flags: <defaults>
</compile_context>

<pallas_src>
import math
import jax
import jax.numpy as jnp
from jax.experimental import pallas as pl
from jax.experimental.pallas import tpu as pltpu


# ------------------------------ layout helpers -------------------------------

def _round8(n):
    return ((n + 7) // 8) * 8


def weight_offsets(x_dim, y_dim, H, r_dim, z_dim):
    """Row offsets of each sub-block inside the single packed weight slab.
    Every offset is a multiple of 8 (sublane-aligned -> slices are free views)."""
    din_p = _round8(x_dim + y_dim)
    r_p = _round8(r_dim)
    z_p = _round8(z_dim)
    offs = {}
    cur = 0

    def add(name, rows):
        nonlocal cur
        offs[name] = cur
        cur += rows

    add('zw1', din_p); add('zw2', H); add('zwh', H)          # latent z-encoder
    add('dw1', din_p); add('dw2', H); add('dwr', H)          # deterministic r-encoder
    add('w1x', din_p); add('w1r', r_p); add('w1z', z_p)      # decoder layer-1 (split rows)
    add('w2d', H);     add('whd', H)                         # decoder layer-2 + head
    return offs, cur, din_p, r_p, z_p


def _vmem_limit_bytes():
    """Generation-aware scoped-VMEM limit: ~48 MiB-class headroom on v7x (64 MiB
    physical), up to ~100 MiB on v5e/v6e (128 MiB physical)."""
    try:
        cap = int(getattr(pltpu.get_tpu_info(), "vmem_capacity_bytes", 0))
    except Exception:
        cap = 0
    if cap <= 0:
        return 32 * 1024 * 1024
    return int(min(100 * 1024 * 1024, max(32 * 1024 * 1024, cap - 16 * 1024 * 1024)))


# ------------------------------ fused kernel ---------------------------------

def make_np_kernel(Nc, Nt, x_dim, y_dim, H, r_dim, z_dim, offs, din_p,
                   training=False, mxu_dtype=jnp.float32):
    """One grid step == one batch element. ct_ref holds (C | T) stacked rows."""
    f32 = jnp.float32
    inv_nc = 1.0 / float(Nc)
    inv_nt = 1.0 / float(Nt)
    log2pi = float(math.log(2.0 * math.pi))

    def kernel(ct_ref, eps_ref, w_ref, b_ref, y_ref, scal_ref):
        CT = ct_ref[...].astype(f32)              # [Nc+Nt, din_p]
        eps = eps_ref[...].astype(f32)            # [1, z_dim]

        def mm(a, b):
            # MXU matmul; operands optionally bf16 (v6e/v7x), accumulate f32.
            return jnp.dot(a.astype(mxu_dtype), b.astype(mxu_dtype),
                           preferred_element_type=f32)

        def wv(name, rows):                       # 8-aligned weight-slab view
            o = offs[name]
            return w_ref[o:o + rows, :]

        zw1, zw2, zwh = wv('zw1', din_p), wv('zw2', H), wv('zwh', H)
        dw1, dw2, dwr = wv('dw1', din_p), wv('dw2', H), wv('dwr', H)
        w1x = wv('w1x', din_p)
        w1r = wv('w1r', r_dim)                    # aligned start, real rows only
        w1z = wv('w1z', z_dim)
        w2d, whd = wv('w2d', H), wv('whd', H)
        zb1, zb2, zbh = b_ref[0:1, :], b_ref[1:2, :], b_ref[2:3, :]
        db1, db2, dbr = b_ref[3:4, :], b_ref[4:5, :], b_ref[5:6, :]
        cb1, cb2, cbh = b_ref[6:7, :], b_ref[7:8, :], b_ref[8:9, :]

        # ---------------- latent z-encoder: one chain over stacked (C | T) ----
        h = jnp.maximum(mm(CT, zw1) + zb1, 0.0)
        h = jnp.maximum(mm(h, zw2) + zb2, 0.0)
        hC = jnp.sum(h[:Nc, :], axis=0, keepdims=True) * inv_nc    # [1, H]
        hT = jnp.sum(h[Nc:, :], axis=0, keepdims=True) * inv_nt    # [1, H]

        head_p = mm(hC, zwh) + zbh
        head_q = mm(hT, zwh) + zbh
        mu_p, mu_q = head_p[:, :z_dim], head_q[:, :z_dim]
        sig_p = 0.1 + 0.9 * jax.nn.sigmoid(head_p[:, z_dim:2 * z_dim])
        sig_q = 0.1 + 0.9 * jax.nn.sigmoid(head_q[:, z_dim:2 * z_dim])

        # KL( N(mu_q, sig_q) || N(mu_p, sig_p) ) summed over z_dim (per batch)
        var_p, var_q = jnp.square(sig_p), jnp.square(sig_q)
        kl_el = (jnp.log(sig_p) - jnp.log(sig_q)
                 + (var_q + jnp.square(mu_q - mu_p)) / (2.0 * var_p) - 0.5)
        kl_b = jnp.sum(kl_el, axis=1, keepdims=True)               # (1, 1)

        # reparameterized latent sample (eval -> prior sample, training -> posterior)
        z = (mu_q + sig_q * eps) if training else (mu_p + sig_p * eps)   # [1, z_dim]

        # ---------------- deterministic r-path over the context ---------------
        C = CT[:Nc, :]
        hd = jnp.maximum(mm(C, dw1) + db1, 0.0)
        hd = jnp.maximum(mm(hd, dw2) + db2, 0.0)
        rc = jnp.sum(hd, axis=0, keepdims=True) * inv_nc
        r = (mm(rc, dwr) + dbr)[:, :r_dim]                          # [1, r_dim]

        # ---------------- decoder: split first layer, broadcast (r,z) ---------
        Tt = CT[Nc:, :]                                             # [Nt, din_p]
        Ty = Tt[:, x_dim:x_dim + y_dim]                             # [Nt, y_dim]
        rz = mm(r, w1r) + mm(z, w1z) + cb1                          # [1, H]
        # w1x has zero rows for the y / pad lanes -> full padded T row is safe.
        h1 = jnp.maximum(mm(Tt, w1x) + rz, 0.0)                     # bcast add
        h2 = jnp.maximum(mm(h1, w2d) + cb2, 0.0)
        out = mm(h2, whd) + cbh
        mu = out[:, :y_dim]
        sigma = 0.1 + 0.9 * jax.nn.softplus(out[:, y_dim:2 * y_dim])

        logp = (-0.5 * jnp.square((Ty - mu) / sigma)
                - jnp.log(sigma) - 0.5 * log2pi)                    # Normal.log_prob
        nll_b = -jnp.sum(logp, keepdims=True)                       # (1, 1) partial
        sse_b = jnp.sum(jnp.square(Ty - mu), keepdims=True)         # (1, 1) partial

        # predictions: two sliced stores (no duplicated softplus, no where)
        y_ref[:, 0:y_dim] = mu.astype(y_ref.dtype)
        y_ref[:, y_dim:2 * y_dim] = sigma.astype(y_ref.dtype)

        # per-batch partial losses, reduced in the wrapper
        scal_ref[:, 0:1] = kl_b
        scal_ref[:, 1:2] = nll_b
        scal_ref[:, 2:3] = sse_b
        scal_ref[:, 3:4] = jnp.zeros_like(kl_b)

    return kernel


# ------------------------------ JAX wrapper ----------------------------------

def np_forward(params, dims, C, T, eps, training=False, mxu_dtype=jnp.float32):
    """Returns (NP_loss, KL, NLL, T_MSE, (Ty_mu, Ty_sigma)) — one fused kernel."""
    x_dim, y_dim, H, r_dim, z_dim = dims
    B, Nc, din = C.shape
    Nt = T.shape[1]
    offs, w_rows, din_p, _, _ = weight_offsets(x_dim, y_dim, H, r_dim, z_dim)
    M_b = Nc + Nt

    # stack (C | T) per batch and pad feature lanes to 8 (zero-cost layout work
    # done once in the wrapper instead of an in-kernel VMEM concat).
    CT = jnp.concatenate([C, T], axis=1).astype(jnp.float32)        # [B, M_b, din]
    CT = jnp.pad(CT, ((0, 0), (0, 0), (0, din_p - din)))
    eps3 = eps.reshape(B, 1, z_dim).astype(jnp.float32)

    kernel = make_np_kernel(Nc, Nt, x_dim, y_dim, H, r_dim, z_dim, offs, din_p,
                            training=training, mxu_dtype=mxu_dtype)

    # rough per-call cost (advisory, for XLA scheduling around the custom call)
    fl_b = (2 * M_b * din_p * H + 2 * M_b * H * H + 4 * H * H          # z-encoder
            + 2 * Nc * din_p * H + 2 * Nc * H * H + 2 * H * H          # r-encoder
            + 2 * (r_dim + z_dim) * H                                  # rz
            + 2 * Nt * din_p * H + 4 * Nt * H * H)                     # decoder
    transc = B * (6 * z_dim + 5 * Nt * y_dim)
    bytes_acc = 4 * int(CT.size + eps3.size + params['W'].size + params['Bs'].size
                        + B * Nt * 2 * y_dim + B * 4)
    ce = pl.CostEstimate(flops=int(B * fl_b), transcendentals=int(transc),
                         bytes_accessed=bytes_acc)

    y_out, scal = pl.pallas_call(
        kernel,
        grid=(B,),
        out_shape=(jax.ShapeDtypeStruct((B, Nt, 2 * y_dim), jnp.float32),
                   jax.ShapeDtypeStruct((B, 1, 4), jnp.float32)),
        in_specs=[
            pl.BlockSpec((None, M_b, din_p), lambda b: (b, 0, 0)),      # (C|T) rows
            pl.BlockSpec((None, 1, z_dim), lambda b: (b, 0, 0)),        # eps
            pl.BlockSpec((w_rows, H), lambda b: (0, 0)),                # weight slab (resident)
            pl.BlockSpec((9, H), lambda b: (0, 0)),                     # bias slab (resident)
        ],
        out_specs=(
            pl.BlockSpec((None, Nt, 2 * y_dim), lambda b: (b, 0, 0)),   # mu | sigma
            pl.BlockSpec((None, 1, 4), lambda b: (b, 0, 0)),            # partial losses
        ),
        compiler_params=pltpu.CompilerParams(
            dimension_semantics=("parallel",),
            vmem_limit_bytes=_vmem_limit_bytes()),
        cost_estimate=ce,
    )(CT, eps3, params['W'], params['Bs'])

    # reduce per-batch partials (tiny XLA reductions on (B, 4))
    KL = jnp.sum(scal[:, 0, 0]) / B
    NLL = jnp.sum(scal[:, 0, 1]) / (B * Nt)
    T_MSE = jnp.sum(scal[:, 0, 2]) / (B * Nt * y_dim)
    NP_loss = KL + NLL
    Ty_mu = y_out[:, :, :y_dim]
    Ty_sigma = y_out[:, :, y_dim:]
    return NP_loss, KL, NLL, T_MSE, (Ty_mu, Ty_sigma)


# --------------------------- parameter construction --------------------------

def _linear(key, fan_in, fan_out):
    # PyTorch nn.Linear default init: U(-1/sqrt(fan_in), 1/sqrt(fan_in))
    kw, kb = jax.random.split(key)
    bound = 1.0 / math.sqrt(fan_in)
    w = jax.random.uniform(kw, (fan_in, fan_out), jnp.float32, -bound, bound)
    b = jax.random.uniform(kb, (fan_out,), jnp.float32, -bound, bound)
    return w, b


def make_params(key, x_dim, y_dim, hid_dim, r_dim, z_dim):
    """Packs ALL modules into one weight slab + one bias slab.
    Each sub-block's rows are zero-padded so every offset is 8-aligned."""
    din = x_dim + y_dim
    H = hid_dim
    assert H % 8 == 0 and H >= 2 * z_dim and H >= r_dim and H >= 2 * y_dim
    offs, w_rows, din_p, r_p, z_p = weight_offsets(x_dim, y_dim, H, r_dim, z_dim)
    ks = jax.random.split(key, 11)

    def padr(a, rows):
        return jnp.pad(a, ((0, rows - a.shape[0]), (0, 0)))

    def padc(a, cols):
        return jnp.pad(a, ((0, 0), (0, cols - a.shape[1])))

    # latent z encoder
    zw1, zb1 = _linear(ks[0], din, H)
    zw2, zb2 = _linear(ks[1], H, H)
    zwmu, zbmu = _linear(ks[2], H, z_dim)
    zws, zbs = _linear(ks[3], H, z_dim)
    # deterministic r encoder (consumes C)
    dw1, db1 = _linear(ks[4], din, H)
    dw2, db2 = _linear(ks[5], H, H)
    dwr, dbr = _linear(ks[6], H, r_dim)
    # decoder MLP (input = concat(x, r, z); first layer split into row blocks)
    dec_in = x_dim + r_dim + z_dim
    cw1, cb1 = _linear(ks[7], dec_in, H)
    cw2, cb2 = _linear(ks[8], H, H)
    cwmu, cbmu = _linear(ks[9], H, y_dim)
    cws, cbs = _linear(ks[10], H, y_dim)

    blocks = [
        padr(zw1, din_p), zw2, padc(jnp.concatenate([zwmu, zws], 1), H),
        padr(dw1, din_p), dw2, padc(dwr, H),
        padr(cw1[:x_dim, :], din_p),                    # x rows (y / pad rows zero)
        padr(cw1[x_dim:x_dim + r_dim, :], r_p),         # r rows
        padr(cw1[x_dim + r_dim:, :], z_p),              # z rows
        cw2, padc(jnp.concatenate([cwmu, cws], 1), H),
    ]
    W = jnp.concatenate(blocks, axis=0)
    assert W.shape == (w_rows, H)

    Bs = jnp.stack([
        zb1, zb2, jnp.pad(jnp.concatenate([zbmu, zbs], 0), (0, H - 2 * z_dim)),
        db1, db2, jnp.pad(dbr, (0, H - r_dim)),
        cb1, cb2, jnp.pad(jnp.concatenate([cbmu, cbs], 0), (0, H - 2 * y_dim)),
    ], axis=0)
    return dict(W=W, Bs=Bs)


# ---------------------------------- main --------------------------------------

if __name__ == "__main__":
    key = jax.random.PRNGKey(0)
    kC, kT, kP, kE = jax.random.split(key, 4)

    # small, forward-consistent shapes
    B, Nc, Nt = 2, 8, 16
    x_dim, y_dim = 2, 1
    hid_dim, r_dim, z_dim = 32, 16, 8
    dims = (x_dim, y_dim, hid_dim, r_dim, z_dim)

    C = jax.random.normal(kC, (B, Nc, x_dim + y_dim), jnp.float32)
    T = jax.random.normal(kT, (B, Nt, x_dim + y_dim), jnp.float32)
    eps = jax.random.normal(kE, (B, z_dim), jnp.float32)   # prior-sample noise (eval)

    params = make_params(kP, x_dim, y_dim, hid_dim, r_dim, z_dim)

    loss, KL, NLL, T_MSE, (Ty_mu, Ty_sigma) = np_forward(
        params, dims, C, T, eps, training=False)

    jax.block_until_ready((loss, KL, NLL, T_MSE, Ty_mu, Ty_sigma))
    assert Ty_mu.shape == (B, Nt, y_dim) and Ty_sigma.shape == (B, Nt, y_dim)
    assert bool(jnp.isfinite(loss)) and bool(jnp.isfinite(T_MSE))
    print("KERNEL_OK")
</pallas_src>

<mosaic_0001>
module attributes {stable_mosaic.version = 11 : i64} {
  func.func @kernel(%arg0: i32, %arg1: memref<1x24x8xf32, #tpu.memory_space<vmem>>, %arg2: memref<1x1x8xf32, #tpu.memory_space<vmem>>, %arg3: memref<240x32xf32, #tpu.memory_space<vmem>>, %arg4: memref<9x32xf32, #tpu.memory_space<vmem>>, %arg5: memref<1x16x2xf32, #tpu.memory_space<vmem>>, %arg6: memref<1x1x4xf32, #tpu.memory_space<vmem>>) attributes {dimension_semantics = [#tpu.dimension_semantics<parallel>], iteration_bounds = array<i64: 2>, scalar_prefetch = 0 : i64, scratch_operands = 0 : i64, tpu.core_type = #tpu.core_type<tc>, window_params = [{transform_indices = @transform_0, window_bounds = array<i64: 1, 24, 8>}, {transform_indices = @transform_1, window_bounds = array<i64: 1, 1, 8>}, {pipeline_mode = #tpu.pipeline_mode<synchronous>, transform_indices = @transform_2, window_bounds = array<i64: 240, 32>}, {pipeline_mode = #tpu.pipeline_mode<synchronous>, transform_indices = @transform_3, window_bounds = array<i64: 9, 32>}, {transform_indices = @transform_4, window_bounds = array<i64: 1, 16, 2>}, {transform_indices = @transform_5, window_bounds = array<i64: 1, 1, 4>}]} {
    %c0 = arith.constant 0 : index
    %c0_0 = arith.constant 0 : index
    %c0_1 = arith.constant 0 : index
    %0 = vector.load %arg1[%c0, %c0_0, %c0_1] : memref<1x24x8xf32, #tpu.memory_space<vmem>>, vector<1x24x8xf32>
    %1 = vector.shape_cast %0 : vector<1x24x8xf32> to vector<24x8xf32>
    %c0_2 = arith.constant 0 : index
    %c0_3 = arith.constant 0 : index
    %c0_4 = arith.constant 0 : index
    %2 = vector.load %arg2[%c0_2, %c0_3, %c0_4] : memref<1x1x8xf32, #tpu.memory_space<vmem>>, vector<1x1x8xf32>
    %3 = vector.shape_cast %2 : vector<1x1x8xf32> to vector<1x8xf32>
    %c0_5 = arith.constant 0 : index
    %c0_6 = arith.constant 0 : index
    %4 = vector.load %arg3[%c0_5, %c0_6] : memref<240x32xf32, #tpu.memory_space<vmem>>, vector<8x32xf32>
    %c8 = arith.constant 8 : index
    %c0_7 = arith.constant 0 : index
    %5 = vector.load %arg3[%c8, %c0_7] : memref<240x32xf32, #tpu.memory_space<vmem>>, vector<32x32xf32>
    %c40 = arith.constant 40 : index
    %c0_8 = arith.constant 0 : index
    %6 = vector.load %arg3[%c40, %c0_8] : memref<240x32xf32, #tpu.memory_space<vmem>>, vector<32x32xf32>
    %c72 = arith.constant 72 : index
    %c0_9 = arith.constant 0 : index
    %7 = vector.load %arg3[%c72, %c0_9] : memref<240x32xf32, #tpu.memory_space<vmem>>, vector<8x32xf32>
    %c80 = arith.constant 80 : index
    %c0_10 = arith.constant 0 : index
    %8 = vector.load %arg3[%c80, %c0_10] : memref<240x32xf32, #tpu.memory_space<vmem>>, vector<32x32xf32>
    %c112 = arith.constant 112 : index
    %c0_11 = arith.constant 0 : index
    %9 = vector.load %arg3[%c112, %c0_11] : memref<240x32xf32, #tpu.memory_space<vmem>>, vector<32x32xf32>
    %c144 = arith.constant 144 : index
    %c0_12 = arith.constant 0 : index
    %10 = vector.load %arg3[%c144, %c0_12] : memref<240x32xf32, #tpu.memory_space<vmem>>, vector<8x32xf32>
    %c152 = arith.constant 152 : index
    %c0_13 = arith.constant 0 : index
    %11 = vector.load %arg3[%c152, %c0_13] : memref<240x32xf32, #tpu.memory_space<vmem>>, vector<16x32xf32>
    %c168 = arith.constant 168 : index
    %c0_14 = arith.constant 0 : index
    %12 = vector.load %arg3[%c168, %c0_14] : memref<240x32xf32, #tpu.memory_space<vmem>>, vector<8x32xf32>
    %c176 = arith.constant 176 : index
    %c0_15 = arith.constant 0 : index
    %13 = vector.load %arg3[%c176, %c0_15] : memref<240x32xf32, #tpu.memory_space<vmem>>, vector<32x32xf32>
    %c208 = arith.constant 208 : index
    %c0_16 = arith.constant 0 : index
    %14 = vector.load %arg3[%c208, %c0_16] : memref<240x32xf32, #tpu.memory_space<vmem>>, vector<32x32xf32>
    %c0_17 = arith.constant 0 : index
    %c0_18 = arith.constant 0 : index
    %15 = vector.load %arg4[%c0_17, %c0_18] : memref<9x32xf32, #tpu.memory_space<vmem>>, vector<1x32xf32>
    %c1 = arith.constant 1 : index
    %c0_19 = arith.constant 0 : index
    %16 = vector.load %arg4[%c1, %c0_19] : memref<9x32xf32, #tpu.memory_space<vmem>>, vector<1x32xf32>
    %c2 = arith.constant 2 : index
    %c0_20 = arith.constant 0 : index
    %17 = vector.load %arg4[%c2, %c0_20] : memref<9x32xf32, #tpu.memory_space<vmem>>, vector<1x32xf32>
    %c3 = arith.constant 3 : index
    %c0_21 = arith.constant 0 : index
    %18 = vector.load %arg4[%c3, %c0_21] : memref<9x32xf32, #tpu.memory_space<vmem>>, vector<1x32xf32>
    %c4 = arith.constant 4 : index
    %c0_22 = arith.constant 0 : index
    %19 = vector.load %arg4[%c4, %c0_22] : memref<9x32xf32, #tpu.memory_space<vmem>>, vector<1x32xf32>
    %c5 = arith.constant 5 : index
    %c0_23 = arith.constant 0 : index
    %20 = vector.load %arg4[%c5, %c0_23] : memref<9x32xf32, #tpu.memory_space<vmem>>, vector<1x32xf32>
    %c6 = arith.constant 6 : index
    %c0_24 = arith.constant 0 : index
    %21 = vector.load %arg4[%c6, %c0_24] : memref<9x32xf32, #tpu.memory_space<vmem>>, vector<1x32xf32>
    %c7 = arith.constant 7 : index
    %c0_25 = arith.constant 0 : index
    %22 = vector.load %arg4[%c7, %c0_25] : memref<9x32xf32, #tpu.memory_space<vmem>>, vector<1x32xf32>
    %c8_26 = arith.constant 8 : index
    %c0_27 = arith.constant 0 : index
    %23 = vector.load %arg4[%c8_26, %c0_27] : memref<9x32xf32, #tpu.memory_space<vmem>>, vector<1x32xf32>
    %cst = arith.constant dense<0.000000e+00> : vector<24x32xf32>
    %24 = tpu.matmul %1, %4, %cst {dimension_numbers = #tpu.dot_dimension_numbers<[1], [0], [0], [1], [0, 0, 1, 1], [], []>} : vector<24x8xf32>, vector<8x32xf32>, vector<24x32xf32> -> vector<24x32xf32>
    %25 = vector.broadcast %15 : vector<1x32xf32> to vector<24x32xf32>
    %26 = arith.addf %24, %25 : vector<24x32xf32>
    %cst_28 = arith.constant 0.000000e+00 : f32
    %27 = vector.broadcast %cst_28 : f32 to vector<24x32xf32>
    %28 = arith.maximumf %26, %27 : vector<24x32xf32>
    %cst_29 = arith.constant dense<0.000000e+00> : vector<24x32xf32>
    %29 = tpu.matmul %28, %5, %cst_29 {dimension_numbers = #tpu.dot_dimension_numbers<[1], [0], [0], [1], [0, 0, 1, 1], [], []>} : vector<24x32xf32>, vector<32x32xf32>, vector<24x32xf32> -> vector<24x32xf32>
    %30 = vector.broadcast %16 : vector<1x32xf32> to vector<24x32xf32>
    %31 = arith.addf %29, %30 : vector<24x32xf32>
    %cst_30 = arith.constant 0.000000e+00 : f32
    %32 = vector.broadcast %cst_30 : f32 to vector<24x32xf32>
    %33 = arith.maximumf %31, %32 : vector<24x32xf32>
    %34 = vector.extract_strided_slice %33 {offsets = [0, 0], sizes = [8, 32], strides = [1, 1]} : vector<24x32xf32> to vector<8x32xf32>
    %cst_31 = arith.constant dense<0.000000e+00> : vector<32xf32>
    %35 = vector.multi_reduction <add>, %34, %cst_31 [0] : vector<8x32xf32> to vector<32xf32>
    %36 = vector.shape_cast %35 : vector<32xf32> to vector<1x32xf32>
    %cst_32 = arith.constant 1.250000e-01 : f32
    %37 = vector.broadcast %cst_32 : f32 to vector<1x32xf32>
    %38 = arith.mulf %36, %37 : vector<1x32xf32>
    %39 = vector.extract_strided_slice %33 {offsets = [8, 0], sizes = [16, 32], strides = [1, 1]} : vector<24x32xf32> to vector<16x32xf32>
    %cst_33 = arith.constant dense<0.000000e+00> : vector<32xf32>
    %40 = vector.multi_reduction <add>, %39, %cst_33 [0] : vector<16x32xf32> to vector<32xf32>
    %41 = vector.shape_cast %40 : vector<32xf32> to vector<1x32xf32>
    %cst_34 = arith.constant 6.250000e-02 : f32
    %42 = vector.broadcast %cst_34 : f32 to vector<1x32xf32>
    %43 = arith.mulf %41, %42 : vector<1x32xf32>
    %cst_35 = arith.constant dense<0.000000e+00> : vector<1x32xf32>
    %44 = tpu.matmul %38, %6, %cst_35 {dimension_numbers = #tpu.dot_dimension_numbers<[1], [0], [0], [1], [0, 0, 1, 1], [], []>} : vector<1x32xf32>, vector<32x32xf32>, vector<1x32xf32> -> vector<1x32xf32>
    %45 = arith.addf %44, %17 : vector<1x32xf32>
    %cst_36 = arith.constant dense<0.000000e+00> : vector<1x32xf32>
    %46 = tpu.matmul %43, %6, %cst_36 {dimension_numbers = #tpu.dot_dimension_numbers<[1], [0], [0], [1], [0, 0, 1, 1], [], []>} : vector<1x32xf32>, vector<32x32xf32>, vector<1x32xf32> -> vector<1x32xf32>
    %47 = arith.addf %46, %17 : vector<1x32xf32>
    %48 = vector.extract_strided_slice %45 {offsets = [0, 0], sizes = [1, 8], strides = [1, 1]} : vector<1x32xf32> to vector<1x8xf32>
    %49 = vector.extract_strided_slice %47 {offsets = [0, 0], sizes = [1, 8], strides = [1, 1]} : vector<1x32xf32> to vector<1x8xf32>
    %50 = vector.extract_strided_slice %45 {offsets = [0, 8], sizes = [1, 8], strides = [1, 1]} : vector<1x32xf32> to vector<1x8xf32>
    %51 = arith.negf %50 : vector<1x8xf32>
    %52 = math.exp %51 : vector<1x8xf32>
    %cst_37 = arith.constant 1.000000e+00 : f32
    %53 = vector.broadcast %cst_37 : f32 to vector<1x8xf32>
    %54 = arith.addf %53, %52 : vector<1x8xf32>
    %55 = arith.divf %53, %54 : vector<1x8xf32>
    %cst_38 = arith.constant 0.899999976 : f32
    %56 = vector.broadcast %cst_38 : f32 to vector<1x8xf32>
    %57 = arith.mulf %56, %55 : vector<1x8xf32>
    %cst_39 = arith.constant 1.000000e-01 : f32
    %58 = vector.broadcast %cst_39 : f32 to vector<1x8xf32>
    %59 = arith.addf %58, %57 : vector<1x8xf32>
    %60 = vector.extract_strided_slice %47 {offsets = [0, 8], sizes = [1, 8], strides = [1, 1]} : vector<1x32xf32> to vector<1x8xf32>
    %61 = arith.negf %60 : vector<1x8xf32>
    %62 = math.exp %61 : vector<1x8xf32>
    %cst_40 = arith.constant 1.000000e+00 : f32
    %63 = vector.broadcast %cst_40 : f32 to vector<1x8xf32>
    %64 = arith.addf %63, %62 : vector<1x8xf32>
    %65 = arith.divf %63, %64 : vector<1x8xf32>
    %cst_41 = arith.constant 0.899999976 : f32
    %66 = vector.broadcast %cst_41 : f32 to vector<1x8xf32>
    %67 = arith.mulf %66, %65 : vector<1x8xf32>
    %cst_42 = arith.constant 1.000000e-01 : f32
    %68 = vector.broadcast %cst_42 : f32 to vector<1x8xf32>
    %69 = arith.addf %68, %67 : vector<1x8xf32>
    %70 = arith.mulf %59, %59 : vector<1x8xf32>
    %71 = arith.mulf %69, %69 : vector<1x8xf32>
    %72 = math.log %59 : vector<1x8xf32>
    %73 = math.log %69 : vector<1x8xf32>
    %74 = arith.subf %72, %73 : vector<1x8xf32>
    %75 = arith.subf %49, %48 : vector<1x8xf32>
    %76 = arith.mulf %75, %75 : vector<1x8xf32>
    %77 = arith.addf %71, %76 : vector<1x8xf32>
    %cst_43 = arith.constant 2.000000e+00 : f32
    %78 = vector.broadcast %cst_43 : f32 to vector<1x8xf32>
    %79 = arith.mulf %78, %70 : vector<1x8xf32>
    %80 = arith.divf %77, %79 : vector<1x8xf32>
    %81 = arith.addf %74, %80 : vector<1x8xf32>
    %cst_44 = arith.constant 5.000000e-01 : f32
    %82 = vector.broadcast %cst_44 : f32 to vector<1x8xf32>
    %83 = arith.subf %81, %82 : vector<1x8xf32>
    %cst_45 = arith.constant dense<0.000000e+00> : vector<1xf32>
    %84 = vector.multi_reduction <add>, %83, %cst_45 [1] : vector<1x8xf32> to vector<1xf32>
    %85 = vector.shape_cast %84 : vector<1xf32> to vector<1x1xf32>
    %86 = arith.mulf %59, %3 : vector<1x8xf32>
    %87 = arith.addf %48, %86 : vector<1x8xf32>
    %88 = vector.extract_strided_slice %1 {offsets = [0, 0], sizes = [8, 8], strides = [1, 1]} : vector<24x8xf32> to vector<8x8xf32>
    %cst_46 = arith.constant dense<0.000000e+00> : vector<8x32xf32>
    %89 = tpu.matmul %88, %7, %cst_46 {dimension_numbers = #tpu.dot_dimension_numbers<[1], [0], [0], [1], [0, 0, 1, 1], [], []>} : vector<8x8xf32>, vector<8x32xf32>, vector<8x32xf32> -> vector<8x32xf32>
    %90 = vector.broadcast %18 : vector<1x32xf32> to vector<8x32xf32>
    %91 = arith.addf %89, %90 : vector<8x32xf32>
    %cst_47 = arith.constant 0.000000e+00 : f32
    %92 = vector.broadcast %cst_47 : f32 to vector<8x32xf32>
    %93 = arith.maximumf %91, %92 : vector<8x32xf32>
    %cst_48 = arith.constant dense<0.000000e+00> : vector<8x32xf32>
    %94 = tpu.matmul %93, %8, %cst_48 {dimension_numbers = #tpu.dot_dimension_numbers<[1], [0], [0], [1], [0, 0, 1, 1], [], []>} : vector<8x32xf32>, vector<32x32xf32>, vector<8x32xf32> -> vector<8x32xf32>
    %95 = vector.broadcast %19 : vector<1x32xf32> to vector<8x32xf32>
    %96 = arith.addf %94, %95 : vector<8x32xf32>
    %cst_49 = arith.constant 0.000000e+00 : f32
    %97 = vector.broadcast %cst_49 : f32 to vector<8x32xf32>
    %98 = arith.maximumf %96, %97 : vector<8x32xf32>
    %cst_50 = arith.constant dense<0.000000e+00> : vector<32xf32>
    %99 = vector.multi_reduction <add>, %98, %cst_50 [0] : vector<8x32xf32> to vector<32xf32>
    %100 = vector.shape_cast %99 : vector<32xf32> to vector<1x32xf32>
    %cst_51 = arith.constant 1.250000e-01 : f32
    %101 = vector.broadcast %cst_51 : f32 to vector<1x32xf32>
    %102 = arith.mulf %100, %101 : vector<1x32xf32>
    %cst_52 = arith.constant dense<0.000000e+00> : vector<1x32xf32>
    %103 = tpu.matmul %102, %9, %cst_52 {dimension_numbers = #tpu.dot_dimension_numbers<[1], [0], [0], [1], [0, 0, 1, 1], [], []>} : vector<1x32xf32>, vector<32x32xf32>, vector<1x32xf32> -> vector<1x32xf32>
    %104 = arith.addf %103, %20 : vector<1x32xf32>
    %105 = vector.extract_strided_slice %104 {offsets = [0, 0], sizes = [1, 16], strides = [1, 1]} : vector<1x32xf32> to vector<1x16xf32>
    %106 = vector.extract_strided_slice %1 {offsets = [8, 0], sizes = [16, 8], strides = [1, 1]} : vector<24x8xf32> to vector<16x8xf32>
    %107 = vector.extract_strided_slice %106 {offsets = [0, 2], sizes = [16, 1], strides = [1, 1]} : vector<16x8xf32> to vector<16x1xf32>
    %cst_53 = arith.constant dense<0.000000e+00> : vector<1x32xf32>
    %108 = tpu.matmul %105, %11, %cst_53 {dimension_numbers = #tpu.dot_dimension_numbers<[1], [0], [0], [1], [0, 0, 1, 1], [], []>} : vector<1x16xf32>, vector<16x32xf32>, vector<1x32xf32> -> vector<1x32xf32>
    %cst_54 = arith.constant dense<0.000000e+00> : vector<1x32xf32>
    %109 = tpu.matmul %87, %12, %cst_54 {dimension_numbers = #tpu.dot_dimension_numbers<[1], [0], [0], [1], [0, 0, 1, 1], [], []>} : vector<1x8xf32>, vector<8x32xf32>, vector<1x32xf32> -> vector<1x32xf32>
    %110 = arith.addf %108, %109 : vector<1x32xf32>
    %111 = arith.addf %110, %21 : vector<1x32xf32>
    %cst_55 = arith.constant dense<0.000000e+00> : vector<16x32xf32>
    %112 = tpu.matmul %106, %10, %cst_55 {dimension_numbers = #tpu.dot_dimension_numbers<[1], [0], [0], [1], [0, 0, 1, 1], [], []>} : vector<16x8xf32>, vector<8x32xf32>, vector<16x32xf32> -> vector<16x32xf32>
    %113 = vector.broadcast %111 : vector<1x32xf32> to vector<16x32xf32>
    %114 = arith.addf %112, %113 : vector<16x32xf32>
    %cst_56 = arith.constant 0.000000e+00 : f32
    %115 = vector.broadcast %cst_56 : f32 to vector<16x32xf32>
    %116 = arith.maximumf %114, %115 : vector<16x32xf32>
    %cst_57 = arith.constant dense<0.000000e+00> : vector<16x32xf32>
    %117 = tpu.matmul %116, %13, %cst_57 {dimension_numbers = #tpu.dot_dimension_numbers<[1], [0], [0], [1], [0, 0, 1, 1], [], []>} : vector<16x32xf32>, vector<32x32xf32>, vector<16x32xf32> -> vector<16x32xf32>
    %118 = vector.broadcast %22 : vector<1x32xf32> to vector<16x32xf32>
    %119 = arith.addf %117, %118 : vector<16x32xf32>
    %cst_58 = arith.constant 0.000000e+00 : f32
    %120 = vector.broadcast %cst_58 : f32 to vector<16x32xf32>
    %121 = arith.maximumf %119, %120 : vector<16x32xf32>
    %cst_59 = arith.constant dense<0.000000e+00> : vector<16x32xf32>
    %122 = tpu.matmul %121, %14, %cst_59 {dimension_numbers = #tpu.dot_dimension_numbers<[1], [0], [0], [1], [0, 0, 1, 1], [], []>} : vector<16x32xf32>, vector<32x32xf32>, vector<16x32xf32> -> vector<16x32xf32>
    %123 = vector.broadcast %23 : vector<1x32xf32> to vector<16x32xf32>
    %124 = arith.addf %122, %123 : vector<16x32xf32>
    %125 = vector.extract_strided_slice %124 {offsets = [0, 0], sizes = [16, 1], strides = [1, 1]} : vector<16x32xf32> to vector<16x1xf32>
    %126 = vector.extract_strided_slice %124 {offsets = [0, 1], sizes = [16, 1], strides = [1, 1]} : vector<16x32xf32> to vector<16x1xf32>
    %cst_60 = arith.constant 0.000000e+00 : f32
    %127 = vector.broadcast %cst_60 : f32 to vector<16x1xf32>
    %128 = arith.maximumf %126, %127 : vector<16x1xf32>
    %129 = vector.broadcast %cst_60 : f32 to vector<16x1xf32>
    %130 = arith.subf %126, %129 : vector<16x1xf32>
    %131 = arith.cmpf one, %130, %130 : vector<16x1xf32>
    %132 = vector.broadcast %cst_60 : f32 to vector<16x1xf32>
    %133 = arith.addf %126, %132 : vector<16x1xf32>
    %134 = math.absf %130 : vector<16x1xf32>
    %cst_61 = arith.constant 0.000000e+00 : f32
    %135 = vector.broadcast %cst_61 : f32 to vector<16x1xf32>
    %136 = arith.subf %135, %134 : vector<16x1xf32>
    %137 = math.exp %136 : vector<16x1xf32>
    %138 = math.log1p %137 : vector<16x1xf32>
    %139 = arith.addf %128, %138 : vector<16x1xf32>
    %140 = arith.select %131, %133, %139 : vector<16x1xi1>, vector<16x1xf32>
    %cst_62 = arith.constant 0.899999976 : f32
    %141 = vector.broadcast %cst_62 : f32 to vector<16x1xf32>
    %142 = arith.mulf %141, %140 : vector<16x1xf32>
    %cst_63 = arith.constant 1.000000e-01 : f32
    %143 = vector.broadcast %cst_63 : f32 to vector<16x1xf32>
    %144 = arith.addf %143, %142 : vector<16x1xf32>
    %145 = arith.subf %107, %125 : vector<16x1xf32>
    %146 = arith.divf %145, %144 : vector<16x1xf32>
    %147 = arith.mulf %146, %146 : vector<16x1xf32>
    %cst_64 = arith.constant -5.000000e-01 : f32
    %148 = vector.broadcast %cst_64 : f32 to vector<16x1xf32>
    %149 = arith.mulf %148, %147 : vector<16x1xf32>
    %150 = math.log %144 : vector<16x1xf32>
    %151 = arith.subf %149, %150 : vector<16x1xf32>
    %cst_65 = arith.constant 0.918938517 : f32
    %152 = vector.broadcast %cst_65 : f32 to vector<16x1xf32>
    %153 = arith.subf %151, %152 : vector<16x1xf32>
    %154 = vector.shape_cast %153 : vector<16x1xf32> to vector<1x16x1xf32>
    %cst_66 = arith.constant dense<0.000000e+00> : vector<1xf32>
    %155 = vector.multi_reduction <add>, %154, %cst_66 [1, 2] : vector<1x16x1xf32> to vector<1xf32>
    %156 = vector.shape_cast %155 : vector<1xf32> to vector<1x1x1xf32>
    %157 = vector.extract %156[0, 0, 0] : f32 from vector<1x1x1xf32>
    %158 = vector.broadcast %157 : f32 to vector<1x1xf32>
    %cst_67 = arith.constant 0.000000e+00 : f32
    %159 = vector.broadcast %cst_67 : f32 to vector<1x1xf32>
    %160 = arith.subf %159, %158 : vector<1x1xf32>
    %161 = arith.subf %107, %125 : vector<16x1xf32>
    %162 = arith.mulf %161, %161 : vector<16x1xf32>
    %163 = vector.shape_cast %162 : vector<16x1xf32> to vector<1x16x1xf32>
    %cst_68 = arith.constant dense<0.000000e+00> : vector<1xf32>
    %164 = vector.multi_reduction <add>, %163, %cst_68 [1, 2] : vector<1x16x1xf32> to vector<1xf32>
    %165 = vector.shape_cast %164 : vector<1xf32> to vector<1x1x1xf32>
    %166 = vector.extract %165[0, 0, 0] : f32 from vector<1x1x1xf32>
    %167 = vector.broadcast %166 : f32 to vector<1x1xf32>
    %c0_69 = arith.constant 0 : index
    %c0_70 = arith.constant 0 : index
    %c0_71 = arith.constant 0 : index
    %168 = vector.load %arg5[%c0_69, %c0_70, %c0_71] : memref<1x16x2xf32, #tpu.memory_space<vmem>>, vector<1x16x1xf32>
    %169 = vector.shape_cast %168 : vector<1x16x1xf32> to vector<16x1xf32>
    %170 = vector.shape_cast %125 : vector<16x1xf32> to vector<1x16x1xf32>
    tpu.vector_store %arg5[%c0_69, %c0_70, %c0_71], %170 {strides = array<i32>} : memref<1x16x2xf32, #tpu.memory_space<vmem>>, vector<1x16x1xf32>,
    %c0_72 = arith.constant 0 : index
    %c0_73 = arith.constant 0 : index
    %c1_74 = arith.constant 1 : index
    %171 = vector.load %arg5[%c0_72, %c0_73, %c1_74] : memref<1x16x2xf32, #tpu.memory_space<vmem>>, vector<1x16x1xf32>
    %172 = vector.shape_cast %171 : vector<1x16x1xf32> to vector<16x1xf32>
    %173 = vector.shape_cast %144 : vector<16x1xf32> to vector<1x16x1xf32>
    tpu.vector_store %arg5[%c0_72, %c0_73, %c1_74], %173 {strides = array<i32>} : memref<1x16x2xf32, #tpu.memory_space<vmem>>, vector<1x16x1xf32>,
    %c0_75 = arith.constant 0 : index
    %c0_76 = arith.constant 0 : index
    %c0_77 = arith.constant 0 : index
    %174 = vector.load %arg6[%c0_75, %c0_76, %c0_77] : memref<1x1x4xf32, #tpu.memory_space<vmem>>, vector<1x1x1xf32>
    %175 = vector.shape_cast %174 : vector<1x1x1xf32> to vector<1x1xf32>
    %176 = vector.shape_cast %85 : vector<1x1xf32> to vector<1x1x1xf32>
    tpu.vector_store %arg6[%c0_75, %c0_76, %c0_77], %176 {strides = array<i32>} : memref<1x1x4xf32, #tpu.memory_space<vmem>>, vector<1x1x1xf32>,
    %c0_78 = arith.constant 0 : index
    %c0_79 = arith.constant 0 : index
    %c1_80 = arith.constant 1 : index
    %177 = vector.load %arg6[%c0_78, %c0_79, %c1_80] : memref<1x1x4xf32, #tpu.memory_space<vmem>>, vector<1x1x1xf32>
    %178 = vector.shape_cast %177 : vector<1x1x1xf32> to vector<1x1xf32>
    %179 = vector.shape_cast %160 : vector<1x1xf32> to vector<1x1x1xf32>
    tpu.vector_store %arg6[%c0_78, %c0_79, %c1_80], %179 {strides = array<i32>} : memref<1x1x4xf32, #tpu.memory_space<vmem>>, vector<1x1x1xf32>,
    %c0_81 = arith.constant 0 : index
    %c0_82 = arith.constant 0 : index
    %c2_83 = arith.constant 2 : index
    %180 = vector.load %arg6[%c0_81, %c0_82, %c2_83] : memref<1x1x4xf32, #tpu.memory_space<vmem>>, vector<1x1x1xf32>
    %181 = vector.shape_cast %180 : vector<1x1x1xf32> to vector<1x1xf32>
    %182 = vector.shape_cast %167 : vector<1x1xf32> to vector<1x1x1xf32>
    tpu.vector_store %arg6[%c0_81, %c0_82, %c2_83], %182 {strides = array<i32>} : memref<1x1x4xf32, #tpu.memory_space<vmem>>, vector<1x1x1xf32>,
    %cst_84 = arith.constant 0.000000e+00 : f32
    %183 = vector.broadcast %cst_84 : f32 to vector<1x1xf32>
    %c0_85 = arith.constant 0 : index
    %c0_86 = arith.constant 0 : index
    %c3_87 = arith.constant 3 : index
    %184 = vector.load %arg6[%c0_85, %c0_86, %c3_87] : memref<1x1x4xf32, #tpu.memory_space<vmem>>, vector<1x1x1xf32>
    %185 = vector.shape_cast %184 : vector<1x1x1xf32> to vector<1x1xf32>
    %186 = vector.shape_cast %183 : vector<1x1xf32> to vector<1x1x1xf32>
    tpu.vector_store %arg6[%c0_85, %c0_86, %c3_87], %186 {strides = array<i32>} : memref<1x1x4xf32, #tpu.memory_space<vmem>>, vector<1x1x1xf32>,
    return
  }
  func.func @transform_0(%arg0: i32) -> (i32, i32, i32) {
    %c0_i32 = arith.constant 0 : i32
    %c0_i32_0 = arith.constant 0 : i32
    %c0_i32_1 = arith.constant 0 : i32
    return %arg0, %c0_i32, %c0_i32_0 : i32, i32, i32
  }
  func.func @transform_1(%arg0: i32) -> (i32, i32, i32) {
    %c0_i32 = arith.constant 0 : i32
    %c0_i32_0 = arith.constant 0 : i32
    %c0_i32_1 = arith.constant 0 : i32
    return %arg0, %c0_i32, %c0_i32_0 : i32, i32, i32
  }
  func.func @transform_2(%arg0: i32) -> (i32, i32) {
    %c0_i32 = arith.constant 0 : i32
    %c0_i32_0 = arith.constant 0 : i32
    %c0_i32_1 = arith.constant 0 : i32
    return %c0_i32, %c0_i32_0 : i32, i32
  }
  func.func @transform_3(%arg0: i32) -> (i32, i32) {
    %c0_i32 = arith.constant 0 : i32
    %c0_i32_0 = arith.constant 0 : i32
    %c0_i32_1 = arith.constant 0 : i32
    return %c0_i32, %c0_i32_0 : i32, i32
  }
  func.func @transform_4(%arg0: i32) -> (i32, i32, i32) {
    %c0_i32 = arith.constant 0 : i32
    %c0_i32_0 = arith.constant 0 : i32
    %c0_i32_1 = arith.constant 0 : i32
    return %arg0, %c0_i32, %c0_i32_0 : i32, i32, i32
  }
  func.func @transform_5(%arg0: i32) -> (i32, i32, i32) {
    %c0_i32 = arith.constant 0 : i32
    %c0_i32_0 = arith.constant 0 : i32
    %c0_i32_1 = arith.constant 0 : i32
    return %arg0, %c0_i32, %c0_i32_0 : i32, i32, i32
  }
}

</mosaic_0001>

<bundles_post_ra>
// kernel: tpu_custom_call.1
= control target key start
LH: loop header
LB: loop body
LE: loop exit
PB: predicated region body
PF: predicated region fallthrough
CT: control target
= control target key end

     0   :  { %11 = vsyncpa [#allocation3], 0  ;;  %s1542_s0 = inlined_call_operand.vmem [shape: f32[2,24,8], index: 0, kind: input, shape index: {}]   ;;  %s1543_s1 = inlined_call_operand.vmem [shape: f32[2,1,8], index: 1, kind: input, shape index: {}]   ;;  %s1544_s2 = inlined_call_operand.vmem [shape: f32[240,32], index: 2, kind: input, shape index: {}]   ;;  %s1545_s3 = inlined_call_operand.vmem [shape: f32[9,32], index: 3, kind: input, shape index: {}]   ;;  %s1546_s4 = inlined_call_operand.vmem [shape: f32[2,16,2], index: 4, kind: output, shape index: {0}]   ;;  %s1547_s5 = inlined_call_operand.hbm [shape: f32[2,1,4], index: 5, kind: output, shape index: {1}]  }
   0x1   :  { %13 = vsyncpa [#allocation3 + $0x1], 0  ;;  %s1242_s18 = smov 0   ;;  %s1244_s19 = smov 0  }
   0x2   :  { %s1246_s20 = smov 0   ;;  %s1248_s21 = smov 0  }
   0x3 LB: > { %s1263_s22 = sadd.s32 4294967295, %s1204_s21   ;;  %s1020_s23 = sadd.s32 4294967294, %s1204_s21   ;;  %s1204_s21 = sphi %s1248_s21, %s1553_s21   ;;  %s1200_s20 = sphi %s1246_s20, %s1552_s20   ;;  %s1196_s19 = sphi %s1244_s19, %s1551_s19   ;;  %s1192_s18 = sphi %s1242_s18, %s1550_s18  }
   0x4   : > { %s1267_s24 = sadd.s32 1, %s1204_s21   ;;  %s146_s25 = sadd.s32 1, %s1200_s20 }
   0x5   : > { %s143_s26 = ssub.s32 %s1204_s21, %s1267_s24  ;;  %p156_p0 = scmp.ne.s32.totalorder %s1200_s20, %s1196_s19 }
   0x6   : > { %p144_p1 = scmp.eq.s32.totalorder %s143_s26, 0  ;;  %p157_p2 = scmp.eq.s32.totalorder %s1263_s22, 1 }
   0x7   : > { %p162_p3 = scmp.ne.s32.totalorder %s1196_s19, %s1192_s18  ;;  %p163_p4 = scmp.eq.s32.totalorder %s1020_s23, 1 }
   0x8   : > { %s1278_s27 = scalar_select %p144_p1, %s1200_s20, %s146_s25  }
   0x9   : > { %p1280_p5 = por %p157_p2, %p156_p0  ;;  %p1284_p6 = por %p163_p4, %p162_p3 }
   0xa   : > { %p1023_p7 = scmp.ge.s32.totalorder %s1204_s21, 1  ;;  %p201_p8 = scmp.lt.s32.totalorder %s1204_s21, 3 }
   0xc   : > { %p202_p9 = pnand %p1023_p7, %p201_p8 }
   0xd   : > { %p236_p10 = scmp.lt.s32.totalorder (!%p202_p9), %s1263_s22, 1  ;;  %s1206_s6 = smov (!%p202_p9), 8  }
   0xe   : > { %205 = sbr.rel (%p202_p9) target bundleno = 1688 (0x698), region = 36  ;;  %s1207_s26 = smov (!%p202_p9), 120  }
   0xf   : > { %s1208_s14 = smov (!%p202_p9), 2   ;;  %s1210_s15 = smov (!%p202_p9), 126  }
  0x10   : > { %s927_s23 = scalar_lea.hbm (!%p202_p9), %s1547_s5, %s1263_s22 }
  0x13   : > { %v253_v0 = vld [vmem:[%s1544_s2] sm:$0xff]  ;;  %s1298_s9 = scalar_select %p236_p10, %s1263_s22, 1  ;;  %vm293_vm0 = vcmask 64512   ;;  %v256_v5 = vld [vmem:[%s1544_s2 + $0x18] sm:$0xff]  ;;  %v255_v6 = vld [vmem:[%s1544_s2 + $0x10] sm:$0xff]  ;;  %vm333_vm1 = vcmask 261120  }
  0x14   : > { %v257_v1 = vld [vmem:[%s1544_s2 + $0x20] sm:$0xff]  ;;  %318 = vmatpush.msra.mxu0 %v253_v0  ;;  %v254_v7 = vld [vmem:[%s1544_s2 + $0x8] sm:$0xff]  ;;  %v260_v19 = vld [vmem:[%s1544_s2 + $0x38] sm:$0xff]  ;;  %vm630_vm10 = vcmask 130048   ;;  %vm859_vm11 = vcmask 7168   ;;  %vm898_vm14 = vcmask 15368  }
  0x15   : > { %355 = vmatpush.msra.mxu1 %v257_v1  ;;  %s1055_s10 = smul.u32 24, %s1298_s9  ;;  %v1105_v8 = vld [vmem:[%s1545_s3] ss:$0 sm:$0xff]  ;;  %s243_s8 = scalar_lea.vmem %s1543_s1, %s1298_s9  ;;  %v259_v20 = vld [vmem:[%s1544_s2 + $0x30] sm:$0xff]  ;;  %v258_v21 = vld [vmem:[%s1544_s2 + $0x28] sm:$0xff] }
  0x16   : > { %v261_v18 = vld [vmem:[%s1544_s2 + $0x40] sm:$0xff]  ;;  %v262_v22 = vld [vmem:[%s1544_s2 + $0x48] sm:$0xff]  ;;  %v264_v54 = vld [vmem:[%s1544_s2 + $0x58] sm:$0xff]  ;;  %s1053_s7 = sshll.u32 %s1298_s9, 4  ;;  %s1209_s9 = smov 1  }
  0x17   : > { %s240_s13 = scalar_lea.vmem %s1542_s0, %s1055_s10  ;;  %356 = vmatpush.msra.mxu1 %v256_v5  ;;  %405 = vmatpush.msra.mxu2 %v261_v18  ;;  %v1106_v23 = vld [vmem:[%s1545_s3 + $0x1] ss:$0 sm:$0xff]  ;;  %v1107_v29 = vld [vmem:[%s243_s8] ss:$0 sm:$0xff]  ;;  %v266_v52 = vld [vmem:[%s1544_s2 + $0x68] sm:$0xff]  ;;  %s931_s8 = sshll.u32 %s927_s23, 4  ;;  %s932_s8 = int_to_ptr.hbm [resolvable:$true] %s931_s8 }
  0x18   : > { %v1304_v2 = vld [vmem:[%s240_s13] sm:$0xff]  ;;  %v1308_v3 = vld [vmem:[%s240_s13 + $0x8] sm:$0xff]  ;;  %v1312_v4 = vld [vmem:[%s240_s13 + $0x10] sm:$0xff]  ;;  %428 = vmatpush.msra.mxu3 %v261_v18  ;;  %520 = vrot.lane.b32.xlu0 %v1107_v29, %s1206_s6  ;;  %s1479_s13 = scalar_lea.vmem %s1546_s4, %s1053_s7  ;;  %s1156_s10 = sshra.s32 %s932_s8, 4  ;;  %s1157_s10 = int_to_ptr.hbm [resolvable:$true] %s1156_s10 }
  0x19   : > { %1027 = vmatmul.msk.f32.vlgmr.msra.gmra.mxu0 %vm293_vm0, %v1304_v2  ;;  %357 = vmatpush.msra.mxu1 %v255_v6  ;;  %v265_v53 = vld [vmem:[%s1544_s2 + $0x60] sm:$0xff]  ;;  %v263_v55 = vld [vmem:[%s1544_s2 + $0x50] sm:$0xff]  ;;  %s1158_s11 = scalar_lea.hbm %s1157_s10, 1  ;;  %p1163_p0 = scmp.lt.s32.totalorder %s1157_s10, %s1547_s5 }
  0x1a   : > { %406 = vmatpush.msra.mxu2 %v260_v19  ;;  %429 = vmatpush.msra.mxu3 %v260_v19  ;;  %v285_v56 = vld [vmem:[%s1545_s3 + $0x2] sm:$0x1]  ;;  %v1108_v60 = vld [vmem:[%s1545_s3 + $0x3] ss:$0 sm:$0xff]  ;;  %p1159_p11 = scmp.ne.s32.totalorder %s1157_s10, %s1158_s11 }
  0x1b   : > { %358 = vmatpush.msra.mxu1 %v254_v7 }
  0x1c   : > { %407 = vmatpush.msra.mxu2 %v259_v20  ;;  %430 = vmatpush.msra.mxu3 %v259_v20  ;;  %p1160_p12 = pnand %p1159_p11, %p1280_p5 }
  0x1e   : > { %408 = vmatpush.msra.mxu2 %v258_v21  ;;  %431 = vmatpush.msra.mxu3 %v258_v21  ;;  %p1161_p13 = pneg %p1160_p12 }
  0x20   : > { %545 = vmatpush.msrb.mxu2 %v262_v22  ;;  %567 = vmatpush.msrb.mxu3 %v266_v52 }
  0x21   : > { %1028 = vmatmul.msk.f32.gmra.mxu0 %vm293_vm0, %v1308_v3 }
  0x22   : > { %568 = vmatpush.msrb.mxu3 %v265_v53 }
  0x24   : > { %569 = vmatpush.msrb.mxu3 %v264_v54 }
  0x26   : > { %570 = vmatpush.msrb.mxu3 %v263_v55 }
  0x29   : > { %1029 = vmatmul.msk.f32.gmra.mxu0 %vm293_vm0, %v1312_v4 }
  0x8a   : > { %v521_v20 = vpop.permute.xlu0 %520 }
  0x96   : > { %v320_v9 = vpop.f32.mrf.mxu0 }
  0x97   : > { %v321_v10 = vadd.f32 %v1105_v8, %v320_v9 }
  0x99   : > { %v329_v11 = vmax.f32 %v321_v10, 0.0 }
  0x9b   : > { %1030 = vmatmul.msk.f32.vlgmr.msra.gmra.mxu1 %vm333_vm1, %v329_v11 }
  0x9e   : > { %v323_v12 = vpop.f32.mrf.mxu0 }
  0x9f   : > { %v324_v13 = vadd.f32 %v1105_v8, %v323_v12 }
  0xa1   : > { %v330_v14 = vmax.f32 %v324_v13, 0.0 }
  0xa3   : > { %1031 = vmatmul.msk.f32.gmra.mxu1 %vm333_vm1, %v330_v14 }
  0xa6   : > { %v326_v15 = vpop.f32.mrf.mxu0 }
  0xa7   : > { %v327_v16 = vadd.f32 %v1105_v8, %v326_v15 }
  0xa9   : > { %v331_v17 = vmax.f32 %v327_v16, 0.0 }
  0xab   : > { %1032 = vmatmul.msk.f32.gmra.mxu1 %vm333_vm1, %v331_v17 }
 0x118   : > { %v360_v24 = vpop.f32.mrf.mxu1 }
 0x119   : > { %v361_v25 = vadd.f32 %v1106_v23, %v360_v24 }
 0x11b   : > { %v369_v26 = vmax.f32 %v361_v25, 0.0 }
 0x11d   : > { %v372_v27 = vsel %vm333_vm1, %v369_v26, 0.0 }
 0x11e   : > { %v373_v28 = vrot.slane %v372_v27, 4 }
 0x120   : > { %v374_v30 = vadd.f32 %v373_v28, %v372_v27  ;;  %v363_v31 = vpop.f32.mrf.mxu1 }
 0x121   : > { %v364_v33 = vadd.f32 %v1106_v23, %v363_v31 }
 0x122   : > { %v375_v32 = vrot.slane %v374_v30, 2 }
 0x123   : > { %v370_v36 = vmax.f32 %v364_v33, 0.0 }
 0x124   : > { %v376_v34 = vadd.f32 %v375_v32, %v374_v30 }
 0x125   : > { %v380_v41 = vsel %vm333_vm1, %v370_v36, 0.0 }
 0x126   : > { %v377_v35 = vrot.slane %v376_v34, 1 }
 0x128   : > { %v366_v37 = vpop.f32.mrf.mxu1  ;;  %v378_v38 = vadd.f32 %v377_v35, %v376_v34 }
 0x129   : > { %v367_v39 = vadd.f32 %v1106_v23, %v366_v37 }
 0x12a   : > { %v379_v40 = vmul.f32 0.125, %v378_v38 }
 0x12b   : > { %v371_v42 = vmax.f32 %v367_v39, 0.0 }
 0x12c   : > { %1033 = vmatmul.msk.f32.vlgmr.msra.gmra.mxu2 %vm333_vm1, %v379_v40  ;;  %v274_v40 = vld [vmem:[%s1544_s2 + $0xa8] sm:$0xff] }
 0x12d   : > { %v381_v43 = vsel %vm333_vm1, %v371_v42, 0.0  ;;  %v269_v42 = vld [vmem:[%s1544_s2 + $0x80] sm:$0xff] }
 0x12e   : > { %v382_v44 = vadd.f32 %v381_v43, %v380_v41  ;;  %v270_v41 = vld [vmem:[%s1544_s2 + $0x88] sm:$0xff]  ;;  %v268_v43 = vld [vmem:[%s1544_s2 + $0x78] sm:$0xff] }
 0x12f   : > { %599 = vmatpush.msra.mxu2 %v270_v41 }
 0x130   : > { %v383_v45 = vrot.slane %v382_v44, 4 }
 0x131   : > { %600 = vmatpush.msra.mxu2 %v269_v42 }
 0x132   : > { %v384_v46 = vadd.f32 %v383_v45, %v382_v44  ;;  %v267_v44 = vld [vmem:[%s1544_s2 + $0x70] sm:$0xff]  ;;  %v273_v45 = vld [vmem:[%s1544_s2 + $0xa0] sm:$0xff] }
 0x133   : > { %601 = vmatpush.msra.mxu2 %v268_v43  ;;  %648 = vmatpush.msrb.mxu0 %v273_v45 }
 0x134   : > { %v385_v47 = vrot.slane %v384_v46, 2  ;;  %1038 = vmatmul.msk.f32.vlgmr.msrb.gmra.mxu2 %vm293_vm0, %v1304_v2 }
 0x135   : > { %602 = vmatpush.msra.mxu2 %v267_v44 }
 0x136   : > { %v386_v48 = vadd.f32 %v385_v47, %v384_v46  ;;  %v1109_v46 = vld [vmem:[%s1545_s3 + $0x4] ss:$0 sm:$0xff] }
 0x138   : > { %v387_v49 = vrot.slane %v386_v48, 1 }
 0x13a   : > { %v388_v50 = vadd.f32 %v387_v49, %v386_v48 }
 0x13c   : > { %v389_v51 = vmul.f32 0.0625, %v388_v50 }
 0x13e   : > { %1034 = vmatmul.msk.f32.vlgmr.msra.gmra.mxu3 %vm333_vm1, %v389_v51 }
 0x13f   : > { %625 = vmatpush.msra.mxu3 %v274_v40 }
 0x1af   : > { %v410_v57 = vpop.f32.mrf.mxu2 }
 0x1b0   : > { %v1376_v58 = vadd.f32 %v410_v57, %v285_v56 }
 0x1b2   : > { %v1035_v59 = vmul.f32 -1.442695, %v1376_v58 }
 0x1b4   : > { %1112 = vpow2.f32 %v1035_v59 }
 0x1b7   : > { %v547_v61 = vpop.f32.mrf.mxu2 }
 0x1b8   : > { %v548_v62 = vadd.f32 %v1108_v60, %v547_v61  ;;  %v272_v61 = vld [vmem:[%s1544_s2 + $0x98] sm:$0xff] }
 0x1b9   : > { %649 = vmatpush.msrb.mxu0 %v272_v61 }
 0x1ba   : > { %v1113_v63 = vpop.eup %1112  ;;  %v550_v0 = vmax.f32 %v548_v62, 0.0  ;;  %v271_v62 = vld [vmem:[%s1544_s2 + $0x90] sm:$0xff] }
 0x1bb   : > { %v439_v1 = vadd.f32 1.0, %v1113_v63  ;;  %1054 = vmatpush.msrb.mxu1 %v271_v62  ;;  %671 = vmatpush.msra.mxu0 %v271_v62  ;;  %v288_v63 = vld [vmem:[%s1545_s3 + $0x5] sm:$0x1] }
 0x1bc   : > { %1039 = vmatmul.msk.f32.vlgmr.msrb.gmra.mxu3 %vm333_vm1, %v550_v0  ;;  %1044 = vmatmul.msk.f32.vlgmr.msrb.gmra.mxu1 %vm293_vm0, %v1312_v4 }
 0x1bd   : > { %1114 = vrcp.f32 %v439_v1  ;;  %v451_v10 = vand.u32 2147483648, %v439_v1  ;;  %v449_v12 = vand.u32 2147483647, %v439_v1  ;;  %vm445_vm3 = vweird.f32 %v439_v1 }
 0x1bf   : > { %v452_v14 = vor.u32 1.1754944e-38, %v451_v10  ;;  %vm450_vm5 = vcmp.eq.f32.partialorder %v449_v12, 8.507059e+37  ;;  %v281_v10 = vld [vmem:[%s1544_s2 + $0xe0] sm:$0xff] }
 0x1c0   : > { %v289_v12 = vld [vmem:[%s1545_s3 + $0x6] sm:$0x1] }
 0x1c1   : > { %v433_v2 = vpop.f32.mrf.mxu3 }
 0x1c2   : > { %v1383_v5 = vadd.f32 %v433_v2, %v285_v56  ;;  %v278_v2 = vld [vmem:[%s1544_s2 + $0xc8] sm:$0xff] }
 0x1c3   : > { %v1115_v6 = vpop.eup %1114  ;;  %700 = vmatpush.msrb.mxu2 %v278_v2 }
 0x1c4   : > { %v1036_v7 = vmul.f32 -1.442695, %v1383_v5  ;;  %v441_v8 = vmul.f32 %v1115_v6, %v439_v1  ;;  %vm446_vm2 = vweird.f32 %v1115_v6 }
 0x1c5   : > { %vm447_vm4 = vmor %vm445_vm3, %vm446_vm2 }
 0x1c6   : > { %1116 = vpow2.f32 %v1036_v7  ;;  %v442_v9 = vsub.f32 1.0, %v441_v8  ;;  %v276_v7 = vld [vmem:[%s1544_s2 + $0xb8] sm:$0xff]  ;;  %v275_v8 = vld [vmem:[%s1544_s2 + $0xb0] sm:$0xff] }
 0x1c8   : > { %v443_v11 = vmul.f32 %v1115_v6, %v442_v9  ;;  %v282_v9 = vld [vmem:[%s1544_s2 + $0xe8] sm:$0xff] }
 0x1c9   : > { %732 = vmatpush.msrb.mxu3 %v282_v9 }
 0x1ca   : > { %v444_v13 = vadd.f32 %v1115_v6, %v443_v11 }
 0x1cb   : > { %733 = vmatpush.msrb.mxu3 %v281_v10 }
 0x1cc   : > { %v1117_v15 = vpop.eup %1116  ;;  %v448_v16 = vsel %vm447_vm4, %v1115_v6, %v444_v13  ;;  %v277_v6 = vld [vmem:[%s1544_s2 + $0xc0] sm:$0xff] }
 0x1cd   : > { %v460_v17 = vadd.f32 1.0, %v1117_v15  ;;  %v453_v18 = vsel %vm450_vm5, %v452_v14, %v448_v16  ;;  %701 = vmatpush.msrb.mxu2 %v277_v6 }
 0x1ce   : > { %v455_v19 = vmul.f32 0.9, %v453_v18 }
 0x1cf   : > { %1118 = vrcp.f32 %v460_v17  ;;  %v472_v25 = vand.u32 2147483648, %v460_v17  ;;  %vm466_vm6 = vweird.f32 %v460_v17  ;;  %v470_v27 = vand.u32 2147483647, %v460_v17  ;;  %702 = vmatpush.msrb.mxu2 %v276_v7 }
 0x1d0   : > { %v1386_v21 = vadd.f32 0.1, %v455_v19 }
 0x1d1   : > { %v473_v29 = vor.u32 1.1754944e-38, %v472_v25  ;;  %vm471_vm9 = vcmp.eq.f32.partialorder %v470_v27, 8.507059e+37  ;;  %703 = vmatpush.msrb.mxu2 %v275_v8  ;;  %v279_v25 = vld [vmem:[%s1544_s2 + $0xd0] sm:$0xff] }
 0x1d2   : > { %v523_v22 = vmul.f32 %v521_v20, %v1386_v21  ;;  %1120 = vlog2.f32 %v1386_v21 }
 0x1d4   : > { %525 = vrot.lane.b32.xlu0 %v523_v22, %s1207_s26 }
 0x1d5   : > { %v1119_v23 = vpop.eup %1118 }
 0x1d6   : > { %v462_v24 = vmul.f32 %v1119_v23, %v460_v17  ;;  %vm467_vm7 = vweird.f32 %v1119_v23 }
 0x1d7   : > { %vm468_vm8 = vmor %vm466_vm6, %vm467_vm7 }
 0x1d8   : > { %v463_v26 = vsub.f32 1.0, %v462_v24  ;;  %v1121_v35 = vpop.eup %1120  ;;  %v280_v24 = vld [vmem:[%s1544_s2 + $0xd8] sm:$0xff] }
 0x1d9   : > { %v1396_v38 = vmul.f32 0.6931472, %v1121_v35  ;;  %734 = vmatpush.msrb.mxu3 %v280_v24 }
 0x1da   : > { %v464_v28 = vmul.f32 %v1119_v23, %v463_v26  ;;  %v1110_v26 = vld [vmem:[%s1545_s3 + $0x7] ss:$0 sm:$0xff] }
 0x1db   : > { %735 = vmatpush.msrb.mxu3 %v279_v25 }
 0x1dc   : > { %v465_v30 = vadd.f32 %v1119_v23, %v464_v28 }
 0x1de   : > { %v469_v31 = vsel %vm468_vm8, %v1119_v23, %v465_v30 }
 0x1df   : > { %v474_v32 = vsel %vm471_vm9, %v473_v29, %v469_v31 }
 0x1e0   : > { %v476_v33 = vmul.f32 0.9, %v474_v32 }
 0x1e2   : > { %v1391_v34 = vadd.f32 0.1, %v476_v33  ;;  %v1111_v33 = vld [vmem:[%s1545_s3 + $0x8] ss:$0 sm:$0xff] }
 0x1e4   : > { %1122 = vlog2.f32 %v1391_v34 }
 0x1ea   : > { %v1123_v36 = vpop.eup %1122 }
 0x1eb   : > { %v1394_v37 = vmul.f32 0.6931472, %v1123_v36 }
 0x1ed   : > { %v484_v39 = vsub.f32 %v1396_v38, %v1394_v37 }
 0x239   : > { %v676_v20 = vpop.f32.mrf.mxu1 }
 0x23f   : > { %v572_v47 = vpop.f32.mrf.mxu3 }
 0x240   : > { %v573_v48 = vadd.f32 %v1109_v46, %v572_v47 }
 0x242   : > { %v575_v49 = vmax.f32 %v573_v48, 0.0 }
 0x244   : > { %v576_v50 = vsel %vm333_vm1, %v575_v49, 0.0 }
 0x245   : > { %v577_v51 = vrot.slane %v576_v50, 4 }
 0x246   : > { %v526_v52 = vpop.permute.xlu0 %525 }
 0x247   : > { %v578_v53 = vadd.f32 %v577_v51, %v576_v50  ;;  %v528_v54 = vadd.f32 %v526_v52, %v1376_v58 }
 0x249   : > { %v579_v55 = vrot.slane %v578_v53, 2  ;;  %1041 = vmatmul.msk.f32.vlgmr.msra.gmra.mxu3 %vm293_vm0, %v528_v54 }
 0x24b   : > { %v580_v56 = vadd.f32 %v579_v55, %v578_v53 }
 0x24d   : > { %v581_v57 = vrot.slane %v580_v56, 1 }
 0x24f   : > { %v582_v59 = vadd.f32 %v581_v57, %v580_v56 }
 0x251   : > { %v583_v60 = vmul.f32 0.125, %v582_v59 }
 0x253   : > { %1040 = vmatmul.msk.f32.vlgmr.msra.gmra.mxu2 %vm333_vm1, %v583_v60 }
 0x2cc   : > { %v627_v11 = vpop.f32.mrf.mxu3 }
 0x2d6   : > { %v604_v0 = vpop.f32.mrf.mxu2 }
 0x2d7   : > { %v605_v1 = vadd.f32 %v604_v0, %v288_v63 }
 0x2d9   : > { %1042 = vmatmul.msk.f32.vlgmr.msrb.gmra.mxu0 %vm630_vm10, %v605_v1 }
 0x2e1   : > { %1043 = vmatmul.msk.f32.vlgmr.msra.gmra.mxu0 %vm293_vm0, %v1308_v3 }
 0x356   : > { %v651_v13 = vpop.f32.mrf.mxu0 }
 0x357   : > { %v652_v14 = vadd.f32 %v651_v13, %v627_v11 }
 0x359   : > { %v654_v15 = vadd.f32 %v652_v14, %v289_v12 }
 0x35b   : > { %v655_v16 = vperm.slane %v654_v15, 0 }
 0x35d   : > { %v677_v22 = vadd.f32 %v676_v20, %v655_v16 }
 0x35e   : > { %v673_v17 = vpop.f32.mrf.mxu0 }
 0x35f   : > { %v674_v18 = vadd.f32 %v673_v17, %v655_v16  ;;  %v680_v23 = vmax.f32 %v677_v22, 0.0 }
 0x361   : > { %v679_v19 = vmax.f32 %v674_v18, 0.0 }
 0x363   : > { %1045 = vmatmul.msk.f32.vlgmr.msrb.gmra.mxu2 %vm333_vm1, %v679_v19 }
 0x36b   : > { %1046 = vmatmul.msk.f32.gmra.mxu2 %vm333_vm1, %v680_v23 }
 0x3e6   : > { %v705_v27 = vpop.f32.mrf.mxu2 }
 0x3e7   : > { %v706_v28 = vadd.f32 %v1110_v26, %v705_v27 }
 0x3e9   : > { %v711_v29 = vmax.f32 %v706_v28, 0.0 }
 0x3eb   : > { %1047 = vmatmul.msk.f32.vlgmr.msrb.gmra.mxu3 %vm333_vm1, %v711_v29 }
 0x3ee   : > { %v708_v30 = vpop.f32.mrf.mxu2 }
 0x3ef   : > { %v709_v31 = vadd.f32 %v1110_v26, %v708_v30 }
 0x3f1   : > { %v712_v32 = vmax.f32 %v709_v31, 0.0 }
 0x3f3   : > { %1048 = vmatmul.msk.f32.gmra.mxu3 %vm333_vm1, %v712_v32 }
 0x46e   : > { %v737_v35 = vpop.f32.mrf.mxu3 }
 0x46f   : > { %v738_v36 = vadd.f32 %v1111_v33, %v737_v35 }
 0x471   : > { %v749_v40 = vand.u32 2147483647, %v738_v36  ;;  %785 = vrot.lane.b32.xlu2 %v738_v36, %s1208_s14  ;;  %896 = vst.msk [vmem:[%s1479_s13] sm:$0xff] %vm859_vm11, %v738_v36  ;;  %v743_v60 = vmax.f32 %v738_v36, 0.0  ;;  %vm745_vm13 = vcmp.ne.f32.partialorder %v738_v36, %v738_v36 }
 0x473   : > { %v751_v41 = vsub.f32 0.0, %v749_v40 }
 0x475   : > { %v753_v42 = vmul.f32 1.442695, %v751_v41 }
 0x476   : > { %v740_v43 = vpop.f32.mrf.mxu3 }
 0x477   : > { %1124 = vpow2.f32 %v753_v42  ;;  %v741_v44 = vadd.f32 %v1111_v33, %v740_v43 }
 0x479   : > { %v750_v45 = vand.u32 2147483647, %v741_v44  ;;  %787 = vrot.lane.b32.xlu2 %v741_v44, %s1208_s14  ;;  %897 = vst.msk [vmem:[%s1479_s13 + $0x8] sm:$0xff] %vm859_vm11, %v741_v44  ;;  %v744_v10 = vmax.f32 %v741_v44, 0.0  ;;  %vm746_vm0 = vcmp.ne.f32.partialorder %v741_v44, %v741_v44  ;;  %s1162_s14 = scalar_lea.hbm %s1547_s5, 2 }
 0x47a   : > { %p1164_p1 = scmp.lt.s32.totalorder %s1162_s14, %s1158_s11 }
 0x47b   : > { %v752_v46 = vsub.f32 0.0, %v750_v45 }
 0x47c   : > { %p1165_p2 = por %p1164_p1, %p1163_p0 }
 0x47d   : > { %v1125_v47 = vpop.eup %1124  ;;  %v755_v48 = vmul.f32 1.442695, %v752_v46 }
 0x47e   : > { %v757_v49 = vadd.f32 1.0, %v1125_v47  ;;  %v760_v50 = vmul.f32 -0.5, %v1125_v47  ;;  %v763_v52 = vand.u32 2147483647, %v1125_v47  ;;  %p1166_p3 = pnand %p1165_p2, %p1161_p13 }
 0x47f   : > { %1126 = vpow2.f32 %v755_v48 }
 0x480   : > { %1128 = vlog2.f32 %v757_v49  ;;  %v761_v51 = vadd.f32 1.0, %v760_v50  ;;  %vm764_vm12 = vcmp.lt.f32.partialorder %v763_v52, 0.0004427343 }
 0x482   : > { %v762_v57 = vmul.f32 %v1125_v47, %v761_v51 }
 0x485   : > { %v1127_v53 = vpop.eup %1126 }
 0x486   : > { %v1129_v54 = vpop.eup %1128  ;;  %v766_v55 = vadd.f32 1.0, %v1127_v53  ;;  %v769_v59 = vmul.f32 -0.5, %v1127_v53  ;;  %v772_v1 = vand.u32 2147483647, %v1127_v53 }
 0x487   : > { %v759_v56 = vmul.f32 0.6931472, %v1129_v54 }
 0x488   : > { %1130 = vlog2.f32 %v766_v55  ;;  %v770_v63 = vadd.f32 1.0, %v769_v59  ;;  %vm773_vm15 = vcmp.lt.f32.partialorder %v772_v1, 0.0004427343 }
 0x489   : > { %v765_v61 = vsel %vm764_vm12, %v762_v57, %v759_v56 }
 0x48a   : > { %v775_v62 = vadd.f32 %v765_v61, %v743_v60  ;;  %v771_v9 = vmul.f32 %v1127_v53, %v770_v63 }
 0x48c   : > { %v777_v0 = vsel %vm745_vm13, %v738_v36, %v775_v62 }
 0x48d   : > { %v779_v2 = vmul.f32 0.9, %v777_v0 }
 0x48e   : > { %v1131_v6 = vpop.eup %1130 }
 0x48f   : > { %v781_v7 = vadd.f32 0.1, %v779_v2  ;;  %v768_v8 = vmul.f32 0.6931472, %v1131_v6  ;;  %v478_v6 = vmul.f32 %v1386_v21, %v1386_v21 }
 0x491   : > { %795 = vrot.lane.b32.xlu1 %v781_v7, %s1209_s9  ;;  %v774_v11 = vsel %vm773_vm15, %v771_v9, %v768_v8  ;;  %1132 = vlog2.f32 %v781_v7  ;;  %899 = vst.msk [vmem:[%s1479_s13] sm:$0xff] %vm898_vm14, %v781_v7  ;;  %vm903_vm15 = vcmask 8200  }
 0x492   : > { %v776_v12 = vadd.f32 %v774_v11, %v744_v10  ;;  %v492_v11 = vmul.f32 2.0, %v478_v6 }
 0x494   : > { %v778_v13 = vsel %vm746_vm0, %v741_v44, %v776_v12  ;;  %vm498_vm10 = vweird.f32 %v492_v11  ;;  %vm906_vm0 = vcmask 16400  }
 0x495   : > { %v780_v14 = vmul.f32 0.9, %v778_v13 }
 0x497   : > { %v1133_v15 = vpop.eup %1132  ;;  %v782_v16 = vadd.f32 0.1, %v780_v14 }
 0x498   : > { %v836_v17 = vmul.f32 0.6931472, %v1133_v15 }
 0x499   : > { %797 = vrot.lane.b32.xlu1 %v782_v16, %s1209_s9  ;;  %1134 = vlog2.f32 %v782_v16  ;;  %900 = vst.msk [vmem:[%s1479_s13 + $0x8] sm:$0xff] %vm898_vm14, %v782_v16  ;;  %vm901_vm14 = vcmask 0  }
 0x49a   : > { %841 = vrot.lane.b32.xlu0 %v836_v17, %s1209_s9 }
 0x49f   : > { %v1135_v18 = vpop.eup %1134 }
 0x4a0   : > { %v838_v19 = vmul.f32 0.6931472, %v1135_v18 }
 0x4a2   : > { %843 = vrot.lane.b32.xlu1 %v838_v19, %s1209_s9  ;;  %v504_v19 = vand.u32 2147483648, %v492_v11 }
 0x4cb   : > { %v786_v20 = vpop.permute.xlu2 %785 }
 0x4cc   : > { %v791_v22 = vsub.f32 %v1308_v3, %v786_v20  ;;  %v502_v20 = vand.u32 2147483647, %v492_v11 }
 0x4ce   : > { %v874_v23 = vmul.f32 %v791_v22, %v791_v22  ;;  %vm503_vm13 = vcmp.eq.f32.partialorder %v502_v20, 8.507059e+37 }
 0x4d0   : > { %878 = vrot.lane.b32.xlu1 %v874_v23, %s1210_s15 }
 0x4d3   : > { %v788_v47 = vpop.permute.xlu2 %787 }
 0x4d4   : > { %v792_v52 = vsub.f32 %v1312_v4, %v788_v47  ;;  %v485_v4 = vsub.f32 %v1383_v5, %v1376_v58 }
 0x4d6   : > { %v875_v63 = vmul.f32 %v792_v52, %v792_v52  ;;  %v486_v1 = vmul.f32 %v485_v4, %v485_v4 }
 0x503   : > { %v796_v24 = vpop.permute.xlu1 %795 }
 0x504   : > { %1136 = vrcp.f32 %v796_v24  ;;  %v812_v29 = vand.u32 2147483648, %v796_v24  ;;  %v810_v31 = vand.u32 2147483647, %v796_v24  ;;  %vm806_vm2 = vweird.f32 %v796_v24 }
 0x506   : > { %v813_v3 = vor.u32 1.1754944e-38, %v812_v29  ;;  %vm811_vm4 = vcmp.eq.f32.partialorder %v810_v31, 8.507059e+37 }
 0x50a   : > { %v1137_v25 = vpop.eup %1136 }
 0x50b   : > { %v802_v26 = vmul.f32 %v1137_v25, %v796_v24  ;;  %v798_v27 = vpop.permute.xlu1 %797  ;;  %vm807_vm1 = vweird.f32 %v1137_v25 }
 0x50c   : > { %1138 = vrcp.f32 %v798_v27  ;;  %vm808_vm3 = vmor %vm806_vm2, %vm807_vm1  ;;  %v827_v43 = vand.u32 2147483648, %v798_v27  ;;  %v825_v46 = vand.u32 2147483647, %v798_v27  ;;  %vm821_vm6 = vweird.f32 %v798_v27  ;;  %v842_v50 = vpop.permute.xlu0 %841 }
 0x50d   : > { %v803_v28 = vsub.f32 1.0, %v802_v26  ;;  %1140 = vrcp.f32 %v492_v11  ;;  %vm908_vm1 = vcmask 24600  }
 0x50e   : > { %v828_v51 = vor.u32 1.1754944e-38, %v827_v43  ;;  %vm826_vm8 = vcmp.eq.f32.partialorder %v825_v46, 8.507059e+37 }
 0x50f   : > { %v804_v30 = vmul.f32 %v1137_v25, %v803_v28 }
 0x511   : > { %v805_v32 = vadd.f32 %v1137_v25, %v804_v30 }
 0x512   : > { %v1139_v33 = vpop.eup %1138 }
 0x513   : > { %v817_v35 = vmul.f32 %v1139_v33, %v798_v27  ;;  %v809_v36 = vsel %vm808_vm3, %v1137_v25, %v805_v32  ;;  %vm822_vm5 = vweird.f32 %v1139_v33  ;;  %v1141_v13 = vpop.eup %1140  ;;  %v505_v25 = vor.u32 1.1754944e-38, %v504_v19 }
 0x514   : > { %v814_v40 = vsel %vm811_vm4, %v813_v3, %v809_v36  ;;  %vm823_vm7 = vmor %vm821_vm6, %vm822_vm5  ;;  %v844_v61 = vpop.permute.xlu1 %843  ;;  %v494_v14 = vmul.f32 %v1141_v13, %v492_v11  ;;  %vm499_vm9 = vweird.f32 %v1141_v13 }
 0x515   : > { %v818_v41 = vsub.f32 1.0, %v817_v35  ;;  %v815_v42 = vmul.f32 %v814_v40, %v791_v22  ;;  %vm500_vm12 = vmor %vm498_vm10, %vm499_vm9  ;;  %v479_v22 = vmul.f32 %v1391_v34, %v1391_v34 }
 0x516   : > { %v495_v58 = vsub.f32 1.0, %v494_v14 }
 0x517   : > { %v819_v44 = vmul.f32 %v1139_v33, %v818_v41  ;;  %v831_v45 = vmul.f32 %v815_v42, %v815_v42 }
 0x518   : > { %v496_v5 = vmul.f32 %v1141_v13, %v495_v58 }
 0x519   : > { %v833_v48 = vmul.f32 -0.5, %v831_v45  ;;  %v820_v49 = vadd.f32 %v1139_v33, %v819_v44 }
 0x51a   : > { %v497_v18 = vadd.f32 %v1141_v13, %v496_v5 }
 0x51b   : > { %v847_v53 = vsub.f32 %v833_v48, %v842_v50  ;;  %v824_v54 = vsel %vm823_vm7, %v1139_v33, %v820_v49  ;;  %v1211_v50 = vmov 0.0  }
 0x51c   : > { %v829_v55 = vsel %vm826_vm8, %v828_v51, %v824_v54  ;;  %v501_v23 = vsel %vm500_vm12, %v1141_v13, %v497_v18 }
 0x51d   : > { %v1049_v56 = vadd.f32 -0.9189385, %v847_v53  ;;  %v830_v57 = vmul.f32 %v829_v55, %v792_v52  ;;  %v506_v27 = vsel %vm503_vm13, %v505_v25, %v501_v23 }
 0x51f   : > { %v832_v59 = vmul.f32 %v830_v57, %v830_v57  ;;  %853 = vrot.lane.b32.xlu2 %v1049_v56, %s1210_s15 }
 0x521   : > { %v834_v60 = vmul.f32 -0.5, %v832_v59 }
 0x523   : > { %v848_v62 = vsub.f32 %v834_v60, %v844_v61 }
 0x525   : > { %v1050_v0 = vadd.f32 -0.9189385, %v848_v62 }
 0x527   : > { %855 = vrot.lane.b32.xlu0 %v1050_v0, %s1210_s15  ;;  %880 = vrot.lane.b32.xlu2 %v875_v63, %s1210_s15 }
 0x52f   : > { %488 = vrot.lane.b32.xlu0 %v486_v1, %s1206_s6 }
 0x542   : > { %v879_v7 = vpop.permute.xlu1 %878 }
 0x543   : > { %v884_v9 = vsel %vm859_vm11, %v879_v7, 0.0 }
 0x579   : > { %v854_v2 = vpop.permute.xlu2 %853 }
 0x57a   : > { %v860_v16 = vsel %vm859_vm11, %v854_v2, 0.0 }
 0x581   : > { %v881_v8 = vpop.permute.xlu2 %880 }
 0x582   : > { %v885_v10 = vsel %vm859_vm11, %v881_v8, 0.0 }
 0x583   : > { %v886_v12 = vadd.f32 %v885_v10, %v884_v9 }
 0x585   : > { %887 = vadd.xlane.f32.xlu2 %v886_v12 }
 0x599   : > { %v856_v15 = vpop.permute.xlu0 %855 }
 0x59a   : > { %v861_v17 = vsel %vm859_vm11, %v856_v15, 0.0  ;;  %vm514_vm11 = vcmask 57344  }
 0x59b   : > { %v862_v21 = vadd.f32 %v861_v17, %v860_v16 }
 0x59d   : > { %863 = vadd.xlane.f32.xlu1 %v862_v21 }
 0x5a1   : > { %v489_v24 = vpop.permute.xlu0 %488 }
 0x5a2   : > { %v491_v26 = vadd.f32 %v489_v24, %v479_v22 }
 0x5a4   : > { %v507_v28 = vmul.f32 %v506_v27, %v491_v26 }
 0x5a6   : > { %v508_v29 = vadd.f32 %v507_v28, %v484_v39 }
 0x5a8   : > { %v1037_v30 = vadd.f32 -0.5, %v508_v29 }
 0x5aa   : > { %511 = vrot.lane.b32.xlu0 %v1037_v30, %s1207_s26  ;;  %s234_s26 = sand.u32 1, %s1196_s19  }
 0x5ab   : > { %s235_s25 = scalar_lea.vmem [#allocation2], %s234_s26  ;;  %s916_s22 = scalar_lea.sflag [#allocation3], %s234_s26 }
 0x5ac   : > { %s929_s30 = sshll.u32 %s235_s25, 4  ;;  %s930_s30 = int_to_ptr.vmem [resolvable:$true] %s929_s30 }
 0x5f8   : > { %v888_v31 = vpop.xlane.xlu2 %887 }
 0x5f9   : > { %v889_v32 = vrot.slane %v888_v31, 4 }
 0x5fb   : > { %v890_v33 = vadd.f32 %v889_v32, %v888_v31 }
 0x5fd   : > { %v891_v3 = vrot.slane %v890_v33, 2 }
 0x5ff   : > { %v892_v40 = vadd.f32 %v891_v3, %v890_v33 }
 0x601   : > { %v893_v43 = vrot.slane %v892_v40, 1 }
 0x603   : > { %v894_v39 = vadd.f32 %v893_v43, %v892_v40 }
 0x610   : > { %v864_v35 = vpop.xlane.xlu1 %863 }
 0x611   : > { %v865_v34 = vrot.slane %v864_v35, 4 }
 0x613   : > { %v866_v36 = vadd.f32 %v865_v34, %v864_v35 }
 0x615   : > { %v867_v41 = vrot.slane %v866_v36, 2 }
 0x617   : > { %v868_v42 = vadd.f32 %v867_v41, %v866_v36 }
 0x619   : > { %v869_v44 = vrot.slane %v868_v42, 1 }
 0x61b   : > { %v870_v37 = vadd.f32 %v869_v44, %v868_v42 }
 0x61c   : > { %v512_v38 = vpop.permute.xlu0 %511 }
 0x61d   : > { %1056 = vpush %v870_v37  ;;  %v515_v45 = vsel %vm514_vm11, %v512_v38, 0.0 }
 0x61e   : > { %1058 = vpush %v894_v39  ;;  %516 = vadd.xlane.f32.xlu0 %v515_v45 }
 0x64e   : > { %s1057_s6 = spop %1056 }
 0x64f   : > { %v872_v46 = vstv %s1057_s6  ;;  %s1059_s7 = spop %1058 }
 0x650   : > { %v873_v47 = vsub.f32 0.0, %v872_v46  ;;  %v905_v49 = vstv %s1059_s7 }
 0x691   : > { %v517_v48 = vpop.xlane.xlu0 %516 }
 0x692   : > { %902 = vst.msk [vmem:[%s235_s25] sm:$0x1] %vm901_vm14, %v517_v48 }
 0x693   : > { %904 = vst.msk [vmem:[%s235_s25] sm:$0x1] %vm903_vm15, %v873_v47 }
 0x694   : > { %907 = vst.msk [vmem:[%s235_s25] sm:$0x1] %vm906_vm0, %v905_v49 }
 0x695   : > { %909 = vst.msk [vmem:[%s235_s25] sm:$0x1] %vm908_vm1, %v1211_v50 }
 0x696   : > { %1169 = shalt.err (!%p1166_p3)
}
 0x697   : > { %1060 = dma.vmem_to_hbm [thread:$0]  (%p1280_p5), %s930_s30, 16, %s932_s8, %s916_s22  }
 0x698 PF: > { %p1066_p4 = scmp.ge.s32.totalorder %s1204_s21, 2  ;;  %s951_s6 = sand.u32 1, %s1192_s18  }
 0x699   : > { %s952_s26 = scalar_lea.sflag [#allocation3], %s951_s6 }
 0x69a   : > { %p1063_p7 = pnand %p1066_p4, %p1284_p6 }
 0x69c   : > { %p1064_p8 = pneg %p1063_p7 }
 0x69e   : > { %1187 = dma.done.wait (%p1064_p8), %s952_s26, 16  }
 0x69f   : > { %1189 = vsyncadd (%p1064_p8), %s952_s26, 4294967280  ;;  %p16_p9 = scmp.ge.s32.totalorder %s1267_s24, 4   ;;  %s1550_s18 = smov %s1196_s19 }
 0x6a0   : > { %s1551_s19 = smov %s1200_s20  ;;  %s1552_s20 = smov %s1278_s27 }
 0x6a1   : > { %s1553_s21 = smov %s1267_s24  ;;  %18 = sbr.rel (!%p16_p9) target bundleno = 3 (0x3), region = 86 }
 0x6a6   :  { %957 = vsyncpa [#allocation3], 1 }
 0x6a7   :  { %959 = vsyncpa [#allocation3 + $0x1], 1 }

</bundles_post_ra>
